<compile_context>
chip_gen: v5e
topology: v5e:2x2
jax: 0.10.0
libtpu: 0.0.40
codegen_flags: <defaults>
</compile_context>

<pallas_src>
import jax
import jax.numpy as jnp
from jax.experimental import pallas as pl
from jax.experimental.pallas import tpu as pltpu

SUBLANE = 8
LANE = 128


def _lstm_fc_kernel(x_ref, wih_ref, whh_ref, b_ref, wfc_ref, bfc_ref, out_ref):
    # x_ref:   (T*Bp, D)  bf16 time-major input, batch padded to Bp sublanes
    # wih_ref: (D, 4H)    bf16 input -> gates weights (gate order i, f, g, o)
    # whh_ref: (H, 4H)    bf16 hidden -> gates weights
    # b_ref:   (1, 4H)    f32 combined bias (b_ih + b_hh)
    # wfc_ref: (H, Op)    bf16 final linear weights, O padded to lane width
    # bfc_ref: (1, Op)    f32 final linear bias (padded)
    # out_ref: (Bp, Op)   f32 logits from the last timestep hidden state
    Bp = out_ref.shape[0]
    T = x_ref.shape[0] // Bp
    H = whh_ref.shape[0]
    G = 4 * H

    # Lane constants (built once from a 2-D iota, no HBM traffic):
    #   pre      = 0.5 on sigmoid lanes (i, f, o), 1.0 on tanh lanes (g)
    #   post_off = 0.5 on sigmoid lanes,           0.0 on tanh lanes
    # so that sigmoid(z) = 0.5*tanh(0.5*z) + 0.5 and the per-step activation
    # is a single full-vreg tanh followed by one VPU fma.
    lane = jax.lax.broadcasted_iota(jnp.int32, (1, G), 1)
    is_g = (lane >= 2 * H) & (lane < 3 * H)
    pre = jnp.where(is_g, 1.0, 0.5).astype(jnp.float32)        # (1, G)
    post_off = jnp.where(is_g, 0.0, 0.5).astype(jnp.float32)   # (1, G)
    pre_b = jnp.broadcast_to(pre, (Bp, G))        # hoisted out of the loop
    post_b = jnp.broadcast_to(post_off, (Bp, G))  # (no per-step broadcast)

    # One-shot input projection for all timesteps on the MXU, bias folded in
    # once, pre-scaled for the fused sigmoid.  Kept as a value (registers),
    # NOT a VMEM scratch, so the recurrence has no store->load on its chain.
    xproj = (jnp.dot(x_ref[...], wih_ref[...],
                     preferred_element_type=jnp.float32)
             + b_ref[...]) * pre

    # Hidden->gate weights, pre-scaled once (0.5 is exact in bf16), resident
    # across the whole unrolled loop.
    whh_s = whh_ref[...] * pre.astype(jnp.bfloat16)

    h_b = jnp.zeros((Bp, H), jnp.bfloat16)   # bf16 copy of h for the MXU
    c = jnp.zeros((Bp, H), jnp.float32)

    # T is small and static: unroll so the LLO scheduler gets cross-step
    # visibility (the kernel is latency-bound on this serial chain).
    # If T grows past ~16-32, switch to lax.fori_loop(..., unroll=<small>)
    # and move xproj back into a VMEM scratch to bound live ranges.
    for t in range(T):
        xt = xproj[t * Bp:(t + 1) * Bp, :]            # sublane-aligned slice
        gates = xt + jnp.dot(h_b, whh_s, preferred_element_type=jnp.float32)
        t_act = jnp.tanh(gates)                       # single EUP pass/step
        act = t_act * pre_b + post_b                  # sigmoid/tanh fix-up
        i = act[:, 0 * H:1 * H]
        f = act[:, 1 * H:2 * H]
        g = act[:, 2 * H:3 * H]
        o = act[:, 3 * H:4 * H]
        c = f * c + i * g
        h = o * jnp.tanh(c)
        h_b = h.astype(jnp.bfloat16)

    # Final fully-connected layer on the last hidden state; output stays
    # lane-dense (Op is a multiple of 128); real rows/cols sliced outside.
    out_ref[...] = (
        jnp.dot(h_b, wfc_ref[...], preferred_element_type=jnp.float32)
        + bfc_ref[...]
    )


def _round_up(n, m):
    return max(m, ((n + m - 1) // m) * m)


@jax.jit
def rnn_forward(x_nchw, params):
    """Pallas forward: equivalent of RNN.forward(X) with unit_type='lstm'."""
    wih, whh, b, wfc, bfc = params            # f32, kernel-oriented layouts
    B, C, Himg, W = x_nchw.shape
    T, D = Himg, W * C
    H = whh.shape[0]
    O = wfc.shape[1]

    # Single-vreg gate-lane reasoning in the kernel assumes 4H is lane-tiled.
    if (4 * H) % LANE != 0:
        raise ValueError(f"hidden size {H}: 4*H must be a multiple of {LANE}")

    Bp = _round_up(B, SUBLANE)
    Op = _round_up(O, LANE)

    # Minimal layout glue, fused by XLA under this jit:
    #   bf16 cast first (half the bytes through the transpose), ONE transpose
    #   NCHW -> (T, B, W, C), flatten features to D = W*C (matches PyTorch's
    #   permute(0,2,3,1).reshape ordering), pad batch to the sublane tile,
    #   flatten (T, Bp) so per-step kernel slices are sublane-aligned.
    x_b = x_nchw.astype(jnp.bfloat16)
    x_tm = jnp.transpose(x_b, (2, 0, 3, 1)).reshape(T, B, D)
    x_tm = jnp.pad(x_tm, ((0, 0), (0, Bp - B), (0, 0)))
    x_flat = x_tm.reshape(T * Bp, D)

    wih_b = wih.astype(jnp.bfloat16)
    whh_b = whh.astype(jnp.bfloat16)
    wfc_p = jnp.pad(wfc, ((0, 0), (0, Op - O))).astype(jnp.bfloat16)
    bfc_p = jnp.pad(bfc, ((0, 0), (0, Op - O))).astype(jnp.float32)
    b_f32 = b.astype(jnp.float32)

    vmem = pl.BlockSpec(memory_space=pltpu.MemorySpace.VMEM)
    out_padded = pl.pallas_call(
        _lstm_fc_kernel,
        out_shape=jax.ShapeDtypeStruct((Bp, Op), jnp.float32),
        in_specs=[vmem] * 6,
        out_specs=vmem,
        # No grid: the whole problem (a few KiB) is VMEM-resident; a time-axis
        # grid would only add per-step overhead on a serial recurrence.
    )(x_flat, wih_b, whh_b, b_f32, wfc_p, bfc_p)

    # Padded batch rows / output lanes are discarded here.
    return out_padded[:B, :O]


def init_params(key, input_size, hidden, output):
    """Deterministic PyTorch-style uniform(-1/sqrt(H), 1/sqrt(H)) init."""
    k = 1.0 / float(hidden) ** 0.5
    keys = jax.random.split(key, 6)
    w_ih = jax.random.uniform(keys[0], (4 * hidden, input_size), jnp.float32, -k, k)
    w_hh = jax.random.uniform(keys[1], (4 * hidden, hidden), jnp.float32, -k, k)
    b_ih = jax.random.uniform(keys[2], (4 * hidden,), jnp.float32, -k, k)
    b_hh = jax.random.uniform(keys[3], (4 * hidden,), jnp.float32, -k, k)
    w_fc = jax.random.uniform(keys[4], (output, hidden), jnp.float32, -k, k)
    b_fc = jax.random.uniform(keys[5], (output,), jnp.float32, -k, k)
    # kernel-friendly transposed layouts, pre-summed LSTM biases
    return (w_ih.T, w_hh.T, (b_ih + b_hh)[None, :], w_fc.T, b_fc[None, :])


def rnn_reference(x_nchw, params, matmul_dtype=jnp.float32):
    """Pure-JAX reference of the same forward pass.

    matmul_dtype=jnp.bfloat16 mirrors the kernel's MXU-operand cast
    (f32 accumulation and f32 elementwise everywhere, like the kernel).
    """
    wih, whh, b, wfc, bfc = params
    B, C, Himg, W = x_nchw.shape
    T, D = Himg, W * C
    H = whh.shape[0]
    x_seq = jnp.transpose(x_nchw, (0, 2, 3, 1)).reshape(B, T, D).astype(jnp.float32)

    def mm(a, w):
        return jnp.dot(a.astype(matmul_dtype), w.astype(matmul_dtype),
                       preferred_element_type=jnp.float32)

    def step(carry, x_t):
        h, c = carry
        gates = mm(x_t, wih) + mm(h, whh) + b
        i = jax.nn.sigmoid(gates[:, 0 * H:1 * H])
        f = jax.nn.sigmoid(gates[:, 1 * H:2 * H])
        g = jnp.tanh(gates[:, 2 * H:3 * H])
        o = jax.nn.sigmoid(gates[:, 3 * H:4 * H])
        c = f * c + i * g
        h = o * jnp.tanh(c)
        return (h, c), None

    (h, _), _ = jax.lax.scan(
        step,
        (jnp.zeros((B, H), jnp.float32), jnp.zeros((B, H), jnp.float32)),
        jnp.transpose(x_seq, (1, 0, 2)))
    return mm(h, wfc) + bfc


if __name__ == "__main__":
    key = jax.random.PRNGKey(0)
    kx, kp = jax.random.split(key)

    # image shape [C, H, W] = [1, 8, 16]  ->  seq_size=8, input_size=16
    B, C, Himg, W = 2, 1, 8, 16
    hidden, output = 32, 10              # 4*hidden = 128 = one lane row

    x = jax.random.normal(kx, (B, C, Himg, W), jnp.float32)
    params = init_params(kp, C * W, hidden, output)

    out = jax.block_until_ready(rnn_forward(x, params))

    ref_mxu = rnn_reference(x, params, matmul_dtype=jnp.bfloat16)  # kernel precision
    ref_f32 = rnn_reference(x, params, matmul_dtype=jnp.float32)   # full-f32 semantics

    assert out.shape == (B, output)
    assert jnp.allclose(out, ref_mxu, atol=2e-3, rtol=2e-3), "kernel/reference mismatch"
    assert jnp.allclose(out, ref_f32, atol=5e-2, rtol=5e-2), "kernel drifted from f32 semantics"
    print("KERNEL_OK")
</pallas_src>

<mosaic_0001>
module attributes {stable_mosaic.version = 11 : i64} {
  func.func @_lstm_fc_kernel(%arg0: memref<64x16xbf16, #tpu.memory_space<vmem>>, %arg1: memref<16x128xbf16, #tpu.memory_space<vmem>>, %arg2: memref<32x128xbf16, #tpu.memory_space<vmem>>, %arg3: memref<1x128xf32, #tpu.memory_space<vmem>>, %arg4: memref<32x128xbf16, #tpu.memory_space<vmem>>, %arg5: memref<1x128xf32, #tpu.memory_space<vmem>>, %arg6: memref<8x128xf32, #tpu.memory_space<vmem>>) attributes {dimension_semantics = [], scalar_prefetch = 0 : i64, scratch_operands = 0 : i64, tpu.core_type = #tpu.core_type<tc>} {
    %0 = tpu.iota {dimensions = array<i32: 1>} : vector<1x128xi32>
    %c64_i32 = arith.constant 64 : i32
    %1 = vector.broadcast %c64_i32 : i32 to vector<1x128xi32>
    %2 = arith.cmpi sge, %0, %1 : vector<1x128xi32>
    %c96_i32 = arith.constant 96 : i32
    %3 = vector.broadcast %c96_i32 : i32 to vector<1x128xi32>
    %4 = arith.cmpi slt, %0, %3 : vector<1x128xi32>
    %5 = arith.andi %2, %4 : vector<1x128xi1>
    %cst = arith.constant 1.000000e+00 : f32
    %cst_0 = arith.constant 5.000000e-01 : f32
    %6 = vector.broadcast %cst : f32 to vector<1x128xf32>
    %7 = vector.broadcast %cst_0 : f32 to vector<1x128xf32>
    %8 = arith.select %5, %6, %7 : vector<1x128xi1>, vector<1x128xf32>
    %cst_1 = arith.constant 0.000000e+00 : f32
    %cst_2 = arith.constant 5.000000e-01 : f32
    %9 = vector.broadcast %cst_1 : f32 to vector<1x128xf32>
    %10 = vector.broadcast %cst_2 : f32 to vector<1x128xf32>
    %11 = arith.select %5, %9, %10 : vector<1x128xi1>, vector<1x128xf32>
    %12 = vector.shape_cast %8 : vector<1x128xf32> to vector<1x128xf32>
    %13 = vector.broadcast %12 : vector<1x128xf32> to vector<8x128xf32>
    %14 = vector.shape_cast %11 : vector<1x128xf32> to vector<1x128xf32>
    %15 = vector.broadcast %14 : vector<1x128xf32> to vector<8x128xf32>
    %c0 = arith.constant 0 : index
    %c0_3 = arith.constant 0 : index
    %16 = vector.load %arg0[%c0, %c0_3] : memref<64x16xbf16, #tpu.memory_space<vmem>>, vector<64x16xbf16>
    %c0_4 = arith.constant 0 : index
    %c0_5 = arith.constant 0 : index
    %17 = vector.load %arg1[%c0_4, %c0_5] : memref<16x128xbf16, #tpu.memory_space<vmem>>, vector<16x128xbf16>
    %cst_6 = arith.constant dense<0.000000e+00> : vector<64x128xf32>
    %18 = tpu.matmul %16, %17, %cst_6 {dimension_numbers = #tpu.dot_dimension_numbers<[1], [0], [0], [1], [0, 0, 1, 1], [], []>} : vector<64x16xbf16>, vector<16x128xbf16>, vector<64x128xf32> -> vector<64x128xf32>
    %c0_7 = arith.constant 0 : index
    %c0_8 = arith.constant 0 : index
    %19 = vector.load %arg3[%c0_7, %c0_8] : memref<1x128xf32, #tpu.memory_space<vmem>>, vector<1x128xf32>
    %20 = vector.broadcast %19 : vector<1x128xf32> to vector<64x128xf32>
    %21 = arith.addf %18, %20 : vector<64x128xf32>
    %22 = vector.broadcast %8 : vector<1x128xf32> to vector<64x128xf32>
    %23 = arith.mulf %21, %22 : vector<64x128xf32>
    %c0_9 = arith.constant 0 : index
    %c0_10 = arith.constant 0 : index
    %24 = vector.load %arg2[%c0_9, %c0_10] : memref<32x128xbf16, #tpu.memory_space<vmem>>, vector<32x128xbf16>
    %25 = arith.truncf %8 : vector<1x128xf32> to vector<1x128xbf16>
    %26 = vector.broadcast %25 : vector<1x128xbf16> to vector<32x128xbf16>
    %27 = arith.mulf %24, %26 : vector<32x128xbf16>
    %cst_11 = arith.constant 0.000000e+00 : bf16
    %28 = vector.broadcast %cst_11 : bf16 to vector<8x32xbf16>
    %cst_12 = arith.constant 0.000000e+00 : f32
    %29 = vector.broadcast %cst_12 : f32 to vector<8x32xf32>
    %30 = vector.extract_strided_slice %23 {offsets = [0, 0], sizes = [8, 128], strides = [1, 1]} : vector<64x128xf32> to vector<8x128xf32>
    %cst_13 = arith.constant dense<0.000000e+00> : vector<8x128xf32>
    %31 = tpu.matmul %28, %27, %cst_13 {dimension_numbers = #tpu.dot_dimension_numbers<[1], [0], [0], [1], [0, 0, 1, 1], [], []>} : vector<8x32xbf16>, vector<32x128xbf16>, vector<8x128xf32> -> vector<8x128xf32>
    %32 = arith.addf %30, %31 : vector<8x128xf32>
    %33 = math.tanh %32 : vector<8x128xf32>
    %34 = arith.mulf %33, %13 : vector<8x128xf32>
    %35 = arith.addf %34, %15 : vector<8x128xf32>
    %36 = vector.extract_strided_slice %35 {offsets = [0, 0], sizes = [8, 32], strides = [1, 1]} : vector<8x128xf32> to vector<8x32xf32>
    %37 = vector.extract_strided_slice %35 {offsets = [0, 32], sizes = [8, 32], strides = [1, 1]} : vector<8x128xf32> to vector<8x32xf32>
    %38 = vector.extract_strided_slice %35 {offsets = [0, 64], sizes = [8, 32], strides = [1, 1]} : vector<8x128xf32> to vector<8x32xf32>
    %39 = vector.extract_strided_slice %35 {offsets = [0, 96], sizes = [8, 32], strides = [1, 1]} : vector<8x128xf32> to vector<8x32xf32>
    %40 = arith.mulf %37, %29 : vector<8x32xf32>
    %41 = arith.mulf %36, %38 : vector<8x32xf32>
    %42 = arith.addf %40, %41 : vector<8x32xf32>
    %43 = math.tanh %42 : vector<8x32xf32>
    %44 = arith.mulf %39, %43 : vector<8x32xf32>
    %45 = arith.truncf %44 : vector<8x32xf32> to vector<8x32xbf16>
    %46 = vector.extract_strided_slice %23 {offsets = [8, 0], sizes = [8, 128], strides = [1, 1]} : vector<64x128xf32> to vector<8x128xf32>
    %cst_14 = arith.constant dense<0.000000e+00> : vector<8x128xf32>
    %47 = tpu.matmul %45, %27, %cst_14 {dimension_numbers = #tpu.dot_dimension_numbers<[1], [0], [0], [1], [0, 0, 1, 1], [], []>} : vector<8x32xbf16>, vector<32x128xbf16>, vector<8x128xf32> -> vector<8x128xf32>
    %48 = arith.addf %46, %47 : vector<8x128xf32>
    %49 = math.tanh %48 : vector<8x128xf32>
    %50 = arith.mulf %49, %13 : vector<8x128xf32>
    %51 = arith.addf %50, %15 : vector<8x128xf32>
    %52 = vector.extract_strided_slice %51 {offsets = [0, 0], sizes = [8, 32], strides = [1, 1]} : vector<8x128xf32> to vector<8x32xf32>
    %53 = vector.extract_strided_slice %51 {offsets = [0, 32], sizes = [8, 32], strides = [1, 1]} : vector<8x128xf32> to vector<8x32xf32>
    %54 = vector.extract_strided_slice %51 {offsets = [0, 64], sizes = [8, 32], strides = [1, 1]} : vector<8x128xf32> to vector<8x32xf32>
    %55 = vector.extract_strided_slice %51 {offsets = [0, 96], sizes = [8, 32], strides = [1, 1]} : vector<8x128xf32> to vector<8x32xf32>
    %56 = arith.mulf %53, %42 : vector<8x32xf32>
    %57 = arith.mulf %52, %54 : vector<8x32xf32>
    %58 = arith.addf %56, %57 : vector<8x32xf32>
    %59 = math.tanh %58 : vector<8x32xf32>
    %60 = arith.mulf %55, %59 : vector<8x32xf32>
    %61 = arith.truncf %60 : vector<8x32xf32> to vector<8x32xbf16>
    %62 = vector.extract_strided_slice %23 {offsets = [16, 0], sizes = [8, 128], strides = [1, 1]} : vector<64x128xf32> to vector<8x128xf32>
    %cst_15 = arith.constant dense<0.000000e+00> : vector<8x128xf32>
    %63 = tpu.matmul %61, %27, %cst_15 {dimension_numbers = #tpu.dot_dimension_numbers<[1], [0], [0], [1], [0, 0, 1, 1], [], []>} : vector<8x32xbf16>, vector<32x128xbf16>, vector<8x128xf32> -> vector<8x128xf32>
    %64 = arith.addf %62, %63 : vector<8x128xf32>
    %65 = math.tanh %64 : vector<8x128xf32>
    %66 = arith.mulf %65, %13 : vector<8x128xf32>
    %67 = arith.addf %66, %15 : vector<8x128xf32>
    %68 = vector.extract_strided_slice %67 {offsets = [0, 0], sizes = [8, 32], strides = [1, 1]} : vector<8x128xf32> to vector<8x32xf32>
    %69 = vector.extract_strided_slice %67 {offsets = [0, 32], sizes = [8, 32], strides = [1, 1]} : vector<8x128xf32> to vector<8x32xf32>
    %70 = vector.extract_strided_slice %67 {offsets = [0, 64], sizes = [8, 32], strides = [1, 1]} : vector<8x128xf32> to vector<8x32xf32>
    %71 = vector.extract_strided_slice %67 {offsets = [0, 96], sizes = [8, 32], strides = [1, 1]} : vector<8x128xf32> to vector<8x32xf32>
    %72 = arith.mulf %69, %58 : vector<8x32xf32>
    %73 = arith.mulf %68, %70 : vector<8x32xf32>
    %74 = arith.addf %72, %73 : vector<8x32xf32>
    %75 = math.tanh %74 : vector<8x32xf32>
    %76 = arith.mulf %71, %75 : vector<8x32xf32>
    %77 = arith.truncf %76 : vector<8x32xf32> to vector<8x32xbf16>
    %78 = vector.extract_strided_slice %23 {offsets = [24, 0], sizes = [8, 128], strides = [1, 1]} : vector<64x128xf32> to vector<8x128xf32>
    %cst_16 = arith.constant dense<0.000000e+00> : vector<8x128xf32>
    %79 = tpu.matmul %77, %27, %cst_16 {dimension_numbers = #tpu.dot_dimension_numbers<[1], [0], [0], [1], [0, 0, 1, 1], [], []>} : vector<8x32xbf16>, vector<32x128xbf16>, vector<8x128xf32> -> vector<8x128xf32>
    %80 = arith.addf %78, %79 : vector<8x128xf32>
    %81 = math.tanh %80 : vector<8x128xf32>
    %82 = arith.mulf %81, %13 : vector<8x128xf32>
    %83 = arith.addf %82, %15 : vector<8x128xf32>
    %84 = vector.extract_strided_slice %83 {offsets = [0, 0], sizes = [8, 32], strides = [1, 1]} : vector<8x128xf32> to vector<8x32xf32>
    %85 = vector.extract_strided_slice %83 {offsets = [0, 32], sizes = [8, 32], strides = [1, 1]} : vector<8x128xf32> to vector<8x32xf32>
    %86 = vector.extract_strided_slice %83 {offsets = [0, 64], sizes = [8, 32], strides = [1, 1]} : vector<8x128xf32> to vector<8x32xf32>
    %87 = vector.extract_strided_slice %83 {offsets = [0, 96], sizes = [8, 32], strides = [1, 1]} : vector<8x128xf32> to vector<8x32xf32>
    %88 = arith.mulf %85, %74 : vector<8x32xf32>
    %89 = arith.mulf %84, %86 : vector<8x32xf32>
    %90 = arith.addf %88, %89 : vector<8x32xf32>
    %91 = math.tanh %90 : vector<8x32xf32>
    %92 = arith.mulf %87, %91 : vector<8x32xf32>
    %93 = arith.truncf %92 : vector<8x32xf32> to vector<8x32xbf16>
    %94 = vector.extract_strided_slice %23 {offsets = [32, 0], sizes = [8, 128], strides = [1, 1]} : vector<64x128xf32> to vector<8x128xf32>
    %cst_17 = arith.constant dense<0.000000e+00> : vector<8x128xf32>
    %95 = tpu.matmul %93, %27, %cst_17 {dimension_numbers = #tpu.dot_dimension_numbers<[1], [0], [0], [1], [0, 0, 1, 1], [], []>} : vector<8x32xbf16>, vector<32x128xbf16>, vector<8x128xf32> -> vector<8x128xf32>
    %96 = arith.addf %94, %95 : vector<8x128xf32>
    %97 = math.tanh %96 : vector<8x128xf32>
    %98 = arith.mulf %97, %13 : vector<8x128xf32>
    %99 = arith.addf %98, %15 : vector<8x128xf32>
    %100 = vector.extract_strided_slice %99 {offsets = [0, 0], sizes = [8, 32], strides = [1, 1]} : vector<8x128xf32> to vector<8x32xf32>
    %101 = vector.extract_strided_slice %99 {offsets = [0, 32], sizes = [8, 32], strides = [1, 1]} : vector<8x128xf32> to vector<8x32xf32>
    %102 = vector.extract_strided_slice %99 {offsets = [0, 64], sizes = [8, 32], strides = [1, 1]} : vector<8x128xf32> to vector<8x32xf32>
    %103 = vector.extract_strided_slice %99 {offsets = [0, 96], sizes = [8, 32], strides = [1, 1]} : vector<8x128xf32> to vector<8x32xf32>
    %104 = arith.mulf %101, %90 : vector<8x32xf32>
    %105 = arith.mulf %100, %102 : vector<8x32xf32>
    %106 = arith.addf %104, %105 : vector<8x32xf32>
    %107 = math.tanh %106 : vector<8x32xf32>
    %108 = arith.mulf %103, %107 : vector<8x32xf32>
    %109 = arith.truncf %108 : vector<8x32xf32> to vector<8x32xbf16>
    %110 = vector.extract_strided_slice %23 {offsets = [40, 0], sizes = [8, 128], strides = [1, 1]} : vector<64x128xf32> to vector<8x128xf32>
    %cst_18 = arith.constant dense<0.000000e+00> : vector<8x128xf32>
    %111 = tpu.matmul %109, %27, %cst_18 {dimension_numbers = #tpu.dot_dimension_numbers<[1], [0], [0], [1], [0, 0, 1, 1], [], []>} : vector<8x32xbf16>, vector<32x128xbf16>, vector<8x128xf32> -> vector<8x128xf32>
    %112 = arith.addf %110, %111 : vector<8x128xf32>
    %113 = math.tanh %112 : vector<8x128xf32>
    %114 = arith.mulf %113, %13 : vector<8x128xf32>
    %115 = arith.addf %114, %15 : vector<8x128xf32>
    %116 = vector.extract_strided_slice %115 {offsets = [0, 0], sizes = [8, 32], strides = [1, 1]} : vector<8x128xf32> to vector<8x32xf32>
    %117 = vector.extract_strided_slice %115 {offsets = [0, 32], sizes = [8, 32], strides = [1, 1]} : vector<8x128xf32> to vector<8x32xf32>
    %118 = vector.extract_strided_slice %115 {offsets = [0, 64], sizes = [8, 32], strides = [1, 1]} : vector<8x128xf32> to vector<8x32xf32>
    %119 = vector.extract_strided_slice %115 {offsets = [0, 96], sizes = [8, 32], strides = [1, 1]} : vector<8x128xf32> to vector<8x32xf32>
    %120 = arith.mulf %117, %106 : vector<8x32xf32>
    %121 = arith.mulf %116, %118 : vector<8x32xf32>
    %122 = arith.addf %120, %121 : vector<8x32xf32>
    %123 = math.tanh %122 : vector<8x32xf32>
    %124 = arith.mulf %119, %123 : vector<8x32xf32>
    %125 = arith.truncf %124 : vector<8x32xf32> to vector<8x32xbf16>
    %126 = vector.extract_strided_slice %23 {offsets = [48, 0], sizes = [8, 128], strides = [1, 1]} : vector<64x128xf32> to vector<8x128xf32>
    %cst_19 = arith.constant dense<0.000000e+00> : vector<8x128xf32>
    %127 = tpu.matmul %125, %27, %cst_19 {dimension_numbers = #tpu.dot_dimension_numbers<[1], [0], [0], [1], [0, 0, 1, 1], [], []>} : vector<8x32xbf16>, vector<32x128xbf16>, vector<8x128xf32> -> vector<8x128xf32>
    %128 = arith.addf %126, %127 : vector<8x128xf32>
    %129 = math.tanh %128 : vector<8x128xf32>
    %130 = arith.mulf %129, %13 : vector<8x128xf32>
    %131 = arith.addf %130, %15 : vector<8x128xf32>
    %132 = vector.extract_strided_slice %131 {offsets = [0, 0], sizes = [8, 32], strides = [1, 1]} : vector<8x128xf32> to vector<8x32xf32>
    %133 = vector.extract_strided_slice %131 {offsets = [0, 32], sizes = [8, 32], strides = [1, 1]} : vector<8x128xf32> to vector<8x32xf32>
    %134 = vector.extract_strided_slice %131 {offsets = [0, 64], sizes = [8, 32], strides = [1, 1]} : vector<8x128xf32> to vector<8x32xf32>
    %135 = vector.extract_strided_slice %131 {offsets = [0, 96], sizes = [8, 32], strides = [1, 1]} : vector<8x128xf32> to vector<8x32xf32>
    %136 = arith.mulf %133, %122 : vector<8x32xf32>
    %137 = arith.mulf %132, %134 : vector<8x32xf32>
    %138 = arith.addf %136, %137 : vector<8x32xf32>
    %139 = math.tanh %138 : vector<8x32xf32>
    %140 = arith.mulf %135, %139 : vector<8x32xf32>
    %141 = arith.truncf %140 : vector<8x32xf32> to vector<8x32xbf16>
    %142 = vector.extract_strided_slice %23 {offsets = [56, 0], sizes = [8, 128], strides = [1, 1]} : vector<64x128xf32> to vector<8x128xf32>
    %cst_20 = arith.constant dense<0.000000e+00> : vector<8x128xf32>
    %143 = tpu.matmul %141, %27, %cst_20 {dimension_numbers = #tpu.dot_dimension_numbers<[1], [0], [0], [1], [0, 0, 1, 1], [], []>} : vector<8x32xbf16>, vector<32x128xbf16>, vector<8x128xf32> -> vector<8x128xf32>
    %144 = arith.addf %142, %143 : vector<8x128xf32>
    %145 = math.tanh %144 : vector<8x128xf32>
    %146 = arith.mulf %145, %13 : vector<8x128xf32>
    %147 = arith.addf %146, %15 : vector<8x128xf32>
    %148 = vector.extract_strided_slice %147 {offsets = [0, 0], sizes = [8, 32], strides = [1, 1]} : vector<8x128xf32> to vector<8x32xf32>
    %149 = vector.extract_strided_slice %147 {offsets = [0, 32], sizes = [8, 32], strides = [1, 1]} : vector<8x128xf32> to vector<8x32xf32>
    %150 = vector.extract_strided_slice %147 {offsets = [0, 64], sizes = [8, 32], strides = [1, 1]} : vector<8x128xf32> to vector<8x32xf32>
    %151 = vector.extract_strided_slice %147 {offsets = [0, 96], sizes = [8, 32], strides = [1, 1]} : vector<8x128xf32> to vector<8x32xf32>
    %152 = arith.mulf %149, %138 : vector<8x32xf32>
    %153 = arith.mulf %148, %150 : vector<8x32xf32>
    %154 = arith.addf %152, %153 : vector<8x32xf32>
    %155 = math.tanh %154 : vector<8x32xf32>
    %156 = arith.mulf %151, %155 : vector<8x32xf32>
    %157 = arith.truncf %156 : vector<8x32xf32> to vector<8x32xbf16>
    %c0_21 = arith.constant 0 : index
    %c0_22 = arith.constant 0 : index
    %158 = vector.load %arg4[%c0_21, %c0_22] : memref<32x128xbf16, #tpu.memory_space<vmem>>, vector<32x128xbf16>
    %cst_23 = arith.constant dense<0.000000e+00> : vector<8x128xf32>
    %159 = tpu.matmul %157, %158, %cst_23 {dimension_numbers = #tpu.dot_dimension_numbers<[1], [0], [0], [1], [0, 0, 1, 1], [], []>} : vector<8x32xbf16>, vector<32x128xbf16>, vector<8x128xf32> -> vector<8x128xf32>
    %c0_24 = arith.constant 0 : index
    %c0_25 = arith.constant 0 : index
    %160 = vector.load %arg5[%c0_24, %c0_25] : memref<1x128xf32, #tpu.memory_space<vmem>>, vector<1x128xf32>
    %161 = vector.broadcast %160 : vector<1x128xf32> to vector<8x128xf32>
    %162 = arith.addf %159, %161 : vector<8x128xf32>
    %c0_26 = arith.constant 0 : index
    %c0_27 = arith.constant 0 : index
    %163 = vector.load %arg6[%c0_26, %c0_27] : memref<8x128xf32, #tpu.memory_space<vmem>>, vector<8x128xf32>
    tpu.vector_store %arg6[%c0_26, %c0_27], %162 {strides = array<i32>} : memref<8x128xf32, #tpu.memory_space<vmem>>, vector<8x128xf32>,
    return
  }
}

</mosaic_0001>

<bundles_post_ra>
// kernel: rnn_forward.1
= control target key start
LH: loop header
LB: loop body
LE: loop exit
PB: predicated region body
PF: predicated region fallthrough
CT: control target
= control target key end

     0   :  { %v24_v0 = vlaneseq  ;;  %vm71_vm0 = vcmask 130048   ;;  %v601_v11 = vmov 0.5   ;;  %v602_v19 = vmov 0   ;;  %s604_s29 = smov 32   ;;  %s770_s1 = inlined_call_operand.vmem [shape: bf16[16,128], index: 1, kind: input, shape index: {}]   ;;  %s771_s0 = inlined_call_operand.vmem [shape: bf16[64,16], index: 0, kind: input, shape index: {}]   ;;  %s772_s2 = inlined_call_operand.vmem [shape: bf16[32,128], index: 2, kind: input, shape index: {}]   ;;  %s773_s3 = inlined_call_operand.vmem [shape: f32[1,128], index: 3, kind: input, shape index: {}]   ;;  %s774_s4 = inlined_call_operand.vmem [shape: bf16[32,128], index: 4, kind: input, shape index: {}]   ;;  %s775_s5 = inlined_call_operand.vmem [shape: f32[1,128], index: 5, kind: input, shape index: {}]   ;;  %s776_s6 = inlined_call_operand.vmem [shape: f32[8,128], index: 6, kind: output, shape index: {}]  }
   0x1   :  { %v551_v1 = vld [vmem:[%s770_s1] sm:$0xff]  ;;  %v562_v2 = vld [vmem:[%s772_s2 + $0x8] sm:$0xff]   ;;  %vm137_vm4 = vcmask 261120  }
   0x2   :  { %v547_v3 = vld [vmem:[%s771_s0] sm:$0xff]  ;;  %v25_v4 = vand.u32 127, %v24_v0  ;;  %91 = vmatpush.bf16.msra.mxu0 %v551_v1  ;;  %v560_v6 = vunpack.c.l.bf16 %v562_v2  ;;  %v561_v7 = vunpack.c.h.bf16 %v562_v2  ;;  %v548_v56 = vld [vmem:[%s771_s0 + $0x8] sm:$0xff] }
   0x3   :  { %v555_v5 = vld [vmem:[%s772_s2] sm:$0xff]  }
   0x4   :  { %v556_v8 = vunpack.c.l.bf16 %v555_v5  ;;  %v557_v9 = vunpack.c.h.bf16 %v555_v5  ;;  %vm26_vm1 = vcmp.ge.s32.totalorder %v25_v4, 64  ;;  %vm27_vm2 = vcmp.lt.s32.totalorder %v25_v4, 96  ;;  %v668_v20 = vld [vmem:[%s773_s3] ss:$0 sm:$0xff]  ;;  %s603_s3 = smov 64  }
   0x5   :  { %vm652_vm3 = vmand %vm26_vm1, %vm27_vm2  ;;  %527 = vmatmul.msk.bf16.vlgmr.msra.gmra.mxu0 %vm71_vm0, %v547_v3 }
   0x6   :  { %v659_v12 = vsel %vm652_vm3, 1.0, %v601_v11  ;;  %v674_v28 = vsel %vm652_vm3, 0.0, %v601_v11 }
   0x7   :  { %v133_v13 = vmul.f32 %v560_v6, %v659_v12  ;;  %v134_v14 = vmul.f32 %v561_v7, %v659_v12  ;;  %v131_v15 = vmul.f32 %v556_v8, %v659_v12  ;;  %v132_v16 = vmul.f32 %v557_v9, %v659_v12 }
   0x9   :  { %v136_v17 = vpack.c.bf16 %v134_v14, %v133_v13  ;;  %v135_v18 = vpack.c.bf16 %v132_v16, %v131_v15 }
   0xb   :  { %147 = vmatpush.bf16.msra.mxu1 %v136_v17  ;;  %188 = vmatpush.bf16.msra.mxu2 %v136_v17 }
   0xc   :  { %229 = vmatpush.bf16.msra.mxu3 %v136_v17 }
   0xf   :  { %148 = vmatpush.bf16.msra.mxu1 %v135_v18  ;;  %189 = vmatpush.bf16.msra.mxu2 %v135_v18 }
  0x10   :  { %230 = vmatpush.bf16.msra.mxu3 %v135_v18 }
  0x12   :  { %149 = vmatmul.bf16.vlgmr.msra.gmra.mxu1 %v602_v19 }
  0x13   :  { %270 = vmatpush.bf16.msrb.mxu1 %v136_v17  ;;  %311 = vmatpush.bf16.msrb.mxu2 %v136_v17 }
  0x14   :  { %352 = vmatpush.bf16.msrb.mxu3 %v136_v17 }
  0x15   :  { %528 = vmatmul.msk.bf16.gmra.mxu0 %vm71_vm0, %v548_v56 }
  0x17   :  { %271 = vmatpush.bf16.msrb.mxu1 %v135_v18  ;;  %312 = vmatpush.bf16.msrb.mxu2 %v135_v18 }
  0x18   :  { %353 = vmatpush.bf16.msrb.mxu3 %v135_v18 }
  0x1b   :  { %393 = vmatpush.bf16.msra.mxu1 %v136_v17 }
  0x1f   :  { %394 = vmatpush.bf16.msra.mxu1 %v135_v18 }
  0x82   :  { %v93_v21 = vpop.f32.mrf.mxu0 }
  0x83   :  { %v94_v22 = vadd.f32 %v668_v20, %v93_v21 }
  0x85   :  { %v113_v23 = vmul.f32 %v94_v22, %v659_v12 }
  0x8a   :  { %v95_v41 = vpop.f32.mrf.mxu0 }
  0x8b   :  { %v96_v42 = vadd.f32 %v668_v20, %v95_v41 }
  0x8d   :  { %v114_v43 = vmul.f32 %v96_v42, %v659_v12 }
  0x8f   :  { %v150_v24 = vpop.f32.mrf.mxu1 }
  0x90   :  { %v154_v25 = vadd.f32 %v150_v24, %v113_v23 }
  0x92   :  { %569 = vtanh.f32 %v154_v25  ;;  %v98_v61 = vpop.f32.mrf.mxu0 }
  0x93   :  { %v99_v62 = vadd.f32 %v668_v20, %v98_v61 }
  0x95   :  { %v115_v63 = vmul.f32 %v99_v62, %v659_v12 }
  0x97   :  { %v152_v26 = vpop.f32.mrf.mxu1 }
  0x98   :  { %v570_v27 = vpop.eup %569 }
  0x99   :  { %v156_v29 = vmul.f32 %v570_v27, %v659_v12 }
  0x9b   :  { %v157_v30 = vadd.f32 %v156_v29, %v674_v28 }
  0x9d   :  { %160 = vrot.lane.b32.xlu0 %v157_v30, %s603_s3  ;;  %v158_v33 = vmul.f32 0.0, %v157_v30 }
 0x10f   :  { %v161_v31 = vpop.permute.xlu0 %160 }
 0x110   :  { %v163_v32 = vmul.f32 %v161_v31, %v157_v30 }
 0x112   :  { %165 = vrot.lane.b32.xlu0 %v163_v32, %s604_s29 }
 0x184   :  { %v166_v34 = vpop.permute.xlu0 %165 }
 0x185   :  { %v168_v35 = vadd.f32 %v166_v34, %v158_v33  ;;  %v549_v34 = vld [vmem:[%s771_s0 + $0x10] sm:$0xff] }
 0x186   :  { %529 = vmatmul.msk.bf16.gmra.mxu0 %vm71_vm0, %v549_v34 }
 0x187   :  { %571 = vtanh.f32 %v168_v35 }
 0x18d   :  { %v572_v36 = vpop.eup %571 }
 0x18e   :  { %171 = vrot.lane.b32.xlu1 %v572_v36, %s603_s3 }
 0x200   :  { %v172_v37 = vpop.permute.xlu1 %171 }
 0x201   :  { %v174_v38 = vmul.f32 %v172_v37, %v157_v30 }
 0x203   :  { %v175_v39 = vpack.c.bf16 %v174_v38, %v174_v38 }
 0x205   :  { %177 = vrot.lane.b32.xlu1 %v175_v39, %s604_s29 }
 0x277   :  { %v178_v40 = vpop.permute.xlu1 %177 }
 0x278   :  { %531 = vmatmul.msk.bf16.vlgmr.msra.gmra.mxu2 %vm137_vm4, %v178_v40 }
 0x279   :  { %434 = vmatpush.bf16.msra.mxu2 %v136_v17  ;;  %v100_v17 = vpop.f32.mrf.mxu0 }
 0x27d   :  { %435 = vmatpush.bf16.msra.mxu2 %v135_v18  ;;  %v101_v18 = vadd.f32 %v668_v20, %v100_v17 }
 0x27f   :  { %v116_v19 = vmul.f32 %v101_v18, %v659_v12 }
 0x281   :  { %v103_v39 = vpop.f32.mrf.mxu0 }
 0x282   :  { %v104_v40 = vadd.f32 %v668_v20, %v103_v39 }
 0x284   :  { %v117_v41 = vmul.f32 %v104_v40, %v659_v12 }
 0x2fb   :  { %v191_v44 = vpop.f32.mrf.mxu2 }
 0x2fc   :  { %v195_v45 = vadd.f32 %v191_v44, %v114_v43 }
 0x2fe   :  { %573 = vtanh.f32 %v195_v45 }
 0x303   :  { %v193_v46 = vpop.f32.mrf.mxu2 }
 0x304   :  { %v574_v47 = vpop.eup %573 }
 0x305   :  { %v197_v48 = vmul.f32 %v574_v47, %v659_v12 }
 0x307   :  { %v198_v49 = vadd.f32 %v197_v48, %v674_v28 }
 0x309   :  { %201 = vrot.lane.b32.xlu2 %v198_v49, %s603_s3  ;;  %v199_v52 = vmul.f32 %v198_v49, %v168_v35 }
 0x363   :  { %v202_v50 = vpop.permute.xlu2 %201 }
 0x364   :  { %v204_v51 = vmul.f32 %v202_v50, %v198_v49 }
 0x366   :  { %206 = vrot.lane.b32.xlu2 %v204_v51, %s604_s29 }
 0x3c0   :  { %v207_v53 = vpop.permute.xlu2 %206 }
 0x3c1   :  { %v209_v54 = vadd.f32 %v207_v53, %v199_v52 }
 0x3c3   :  { %575 = vtanh.f32 %v209_v54 }
 0x3c9   :  { %v576_v55 = vpop.eup %575 }
 0x3ca   :  { %212 = vrot.lane.b32.xlu0 %v576_v55, %s603_s3 }
 0x43c   :  { %v213_v57 = vpop.permute.xlu0 %212 }
 0x43d   :  { %v215_v58 = vmul.f32 %v213_v57, %v198_v49 }
 0x43f   :  { %v216_v59 = vpack.c.bf16 %v215_v58, %v215_v58  ;;  %v105_v58 = vpop.f32.mrf.mxu0 }
 0x441   :  { %218 = vrot.lane.b32.xlu1 %v216_v59, %s604_s29  ;;  %v106_v59 = vadd.f32 %v668_v20, %v105_v58 }
 0x4b3   :  { %v219_v60 = vpop.permute.xlu1 %218 }
 0x4b4   :  { %532 = vmatmul.msk.bf16.vlgmr.msra.gmra.mxu3 %vm137_vm4, %v219_v60  ;;  %v118_v60 = vmul.f32 %v106_v59, %v659_v12 }
 0x537   :  { %v232_v0 = vpop.f32.mrf.mxu3 }
 0x538   :  { %v236_v1 = vadd.f32 %v232_v0, %v115_v63 }
 0x53a   :  { %577 = vtanh.f32 %v236_v1 }
 0x53f   :  { %v234_v2 = vpop.f32.mrf.mxu3 }
 0x540   :  { %v578_v3 = vpop.eup %577 }
 0x541   :  { %v238_v4 = vmul.f32 %v578_v3, %v659_v12 }
 0x543   :  { %v239_v5 = vadd.f32 %v238_v4, %v674_v28 }
 0x545   :  { %242 = vrot.lane.b32.xlu2 %v239_v5, %s603_s3  ;;  %v240_v8 = vmul.f32 %v239_v5, %v209_v54 }
 0x59f   :  { %v243_v6 = vpop.permute.xlu2 %242 }
 0x5a0   :  { %v245_v7 = vmul.f32 %v243_v6, %v239_v5 }
 0x5a2   :  { %247 = vrot.lane.b32.xlu0 %v245_v7, %s604_s29 }
 0x614   :  { %v248_v9 = vpop.permute.xlu0 %247 }
 0x615   :  { %v250_v10 = vadd.f32 %v248_v9, %v240_v8  ;;  %v550_v9 = vld [vmem:[%s771_s0 + $0x18] sm:$0xff] }
 0x616   :  { %530 = vmatmul.msk.bf16.gmra.mxu0 %vm71_vm0, %v550_v9 }
 0x617   :  { %579 = vtanh.f32 %v250_v10 }
 0x61d   :  { %v580_v11 = vpop.eup %579 }
 0x61e   :  { %253 = vrot.lane.b32.xlu1 %v580_v11, %s603_s3 }
 0x690   :  { %v254_v13 = vpop.permute.xlu1 %253 }
 0x691   :  { %v256_v14 = vmul.f32 %v254_v13, %v239_v5 }
 0x693   :  { %v257_v15 = vpack.c.bf16 %v256_v14, %v256_v14 }
 0x695   :  { %259 = vrot.lane.b32.xlu2 %v257_v15, %s604_s29  ;;  %v108_v15 = vpop.f32.mrf.mxu0 }
 0x6ef   :  { %v260_v16 = vpop.permute.xlu2 %259 }
 0x6f0   :  { %533 = vmatmul.msk.bf16.vlgmr.msrb.gmra.mxu1 %vm137_vm4, %v260_v16  ;;  %v109_v16 = vadd.f32 %v668_v20, %v108_v15 }
 0x6f2   :  { %v119_v17 = vmul.f32 %v109_v16, %v659_v12 }
 0x76d   :  { %v273_v21 = vpop.f32.mrf.mxu1 }
 0x76e   :  { %v277_v22 = vadd.f32 %v273_v21, %v116_v19 }
 0x770   :  { %581 = vtanh.f32 %v277_v22 }
 0x775   :  { %v275_v23 = vpop.f32.mrf.mxu1 }
 0x776   :  { %v582_v24 = vpop.eup %581 }
 0x777   :  { %v279_v25 = vmul.f32 %v582_v24, %v659_v12 }
 0x779   :  { %v280_v26 = vadd.f32 %v279_v25, %v674_v28 }
 0x77b   :  { %283 = vrot.lane.b32.xlu0 %v280_v26, %s603_s3  ;;  %v281_v30 = vmul.f32 %v280_v26, %v250_v10 }
 0x7ed   :  { %v284_v27 = vpop.permute.xlu0 %283 }
 0x7ee   :  { %v286_v29 = vmul.f32 %v284_v27, %v280_v26 }
 0x7f0   :  { %288 = vrot.lane.b32.xlu1 %v286_v29, %s604_s29 }
 0x862   :  { %v289_v31 = vpop.permute.xlu1 %288 }
 0x863   :  { %v291_v32 = vadd.f32 %v289_v31, %v281_v30 }
 0x865   :  { %583 = vtanh.f32 %v291_v32 }
 0x86b   :  { %v584_v33 = vpop.eup %583 }
 0x86c   :  { %294 = vrot.lane.b32.xlu2 %v584_v33, %s603_s3 }
 0x8c6   :  { %v295_v35 = vpop.permute.xlu2 %294 }
 0x8c7   :  { %v297_v36 = vmul.f32 %v295_v35, %v280_v26 }
 0x8c9   :  { %v298_v37 = vpack.c.bf16 %v297_v36, %v297_v36  ;;  %v110_v36 = vpop.f32.mrf.mxu0 }
 0x8cb   :  { %300 = vrot.lane.b32.xlu0 %v298_v37, %s604_s29  ;;  %v111_v37 = vadd.f32 %v668_v20, %v110_v36 }
 0x93d   :  { %v301_v38 = vpop.permute.xlu0 %300 }
 0x93e   :  { %534 = vmatmul.msk.bf16.vlgmr.msrb.gmra.mxu2 %vm137_vm4, %v301_v38  ;;  %v120_v38 = vmul.f32 %v111_v37, %v659_v12 }
 0x9c1   :  { %v314_v42 = vpop.f32.mrf.mxu2 }
 0x9c2   :  { %v318_v43 = vadd.f32 %v314_v42, %v117_v41 }
 0x9c4   :  { %585 = vtanh.f32 %v318_v43 }
 0x9c9   :  { %v316_v44 = vpop.f32.mrf.mxu2 }
 0x9ca   :  { %v586_v45 = vpop.eup %585 }
 0x9cb   :  { %v320_v46 = vmul.f32 %v586_v45, %v659_v12 }
 0x9cd   :  { %v321_v47 = vadd.f32 %v320_v46, %v674_v28 }
 0x9cf   :  { %324 = vrot.lane.b32.xlu1 %v321_v47, %s603_s3  ;;  %v322_v50 = vmul.f32 %v321_v47, %v291_v32 }
 0xa41   :  { %v325_v48 = vpop.permute.xlu1 %324 }
 0xa42   :  { %v327_v49 = vmul.f32 %v325_v48, %v321_v47 }
 0xa44   :  { %329 = vrot.lane.b32.xlu2 %v327_v49, %s604_s29 }
 0xa9e   :  { %v330_v51 = vpop.permute.xlu2 %329 }
 0xa9f   :  { %v332_v52 = vadd.f32 %v330_v51, %v322_v50  ;;  %v553_v50 = vld [vmem:[%s774_s4 + $0x8] sm:$0xff] }
 0xaa0   :  { %495 = vmatpush.bf16.msra.mxu3 %v553_v50 }
 0xaa1   :  { %587 = vtanh.f32 %v332_v52 }
 0xaa7   :  { %v588_v53 = vpop.eup %587 }
 0xaa8   :  { %335 = vrot.lane.b32.xlu0 %v588_v53, %s603_s3 }
 0xb1a   :  { %v336_v54 = vpop.permute.xlu0 %335 }
 0xb1b   :  { %v338_v55 = vmul.f32 %v336_v54, %v321_v47  ;;  %v568_v54 = vld [vmem:[%s775_s5] ss:$0 sm:$0xff] }
 0xb1d   :  { %v339_v56 = vpack.c.bf16 %v338_v55, %v338_v55 }
 0xb1f   :  { %341 = vrot.lane.b32.xlu1 %v339_v56, %s604_s29 }
 0xb91   :  { %v342_v57 = vpop.permute.xlu1 %341 }
 0xb92   :  { %535 = vmatmul.msk.bf16.vlgmr.msrb.gmra.mxu3 %vm137_vm4, %v342_v57 }
 0xc15   :  { %v355_v61 = vpop.f32.mrf.mxu3 }
 0xc16   :  { %v359_v62 = vadd.f32 %v355_v61, %v118_v60 }
 0xc18   :  { %589 = vtanh.f32 %v359_v62 }
 0xc1d   :  { %v357_v63 = vpop.f32.mrf.mxu3 }
 0xc1e   :  { %v590_v0 = vpop.eup %589 }
 0xc1f   :  { %v361_v1 = vmul.f32 %v590_v0, %v659_v12 }
 0xc21   :  { %v362_v2 = vadd.f32 %v361_v1, %v674_v28 }
 0xc23   :  { %365 = vrot.lane.b32.xlu2 %v362_v2, %s603_s3  ;;  %v363_v5 = vmul.f32 %v362_v2, %v332_v52 }
 0xc7d   :  { %v366_v3 = vpop.permute.xlu2 %365 }
 0xc7e   :  { %v368_v4 = vmul.f32 %v366_v3, %v362_v2 }
 0xc80   :  { %370 = vrot.lane.b32.xlu0 %v368_v4, %s604_s29 }
 0xcf2   :  { %v371_v6 = vpop.permute.xlu0 %370 }
 0xcf3   :  { %v373_v7 = vadd.f32 %v371_v6, %v363_v5 }
 0xcf5   :  { %591 = vtanh.f32 %v373_v7 }
 0xcfb   :  { %v592_v8 = vpop.eup %591 }
 0xcfc   :  { %376 = vrot.lane.b32.xlu1 %v592_v8, %s603_s3 }
 0xd6e   :  { %v377_v10 = vpop.permute.xlu1 %376 }
 0xd6f   :  { %v379_v11 = vmul.f32 %v377_v10, %v362_v2 }
 0xd71   :  { %v380_v13 = vpack.c.bf16 %v379_v11, %v379_v11 }
 0xd73   :  { %382 = vrot.lane.b32.xlu2 %v380_v13, %s604_s29 }
 0xdcd   :  { %v383_v14 = vpop.permute.xlu2 %382 }
 0xdce   :  { %536 = vmatmul.msk.bf16.vlgmr.msra.gmra.mxu1 %vm137_vm4, %v383_v14 }
 0xe4b   :  { %v396_v18 = vpop.f32.mrf.mxu1 }
 0xe4c   :  { %v400_v19 = vadd.f32 %v396_v18, %v119_v17 }
 0xe4e   :  { %593 = vtanh.f32 %v400_v19 }
 0xe53   :  { %v398_v21 = vpop.f32.mrf.mxu1 }
 0xe54   :  { %v594_v22 = vpop.eup %593 }
 0xe55   :  { %v402_v23 = vmul.f32 %v594_v22, %v659_v12 }
 0xe57   :  { %v403_v24 = vadd.f32 %v402_v23, %v674_v28 }
 0xe59   :  { %406 = vrot.lane.b32.xlu0 %v403_v24, %s603_s3  ;;  %v404_v27 = vmul.f32 %v403_v24, %v373_v7 }
 0xecb   :  { %v407_v25 = vpop.permute.xlu0 %406 }
 0xecc   :  { %v409_v26 = vmul.f32 %v407_v25, %v403_v24 }
 0xece   :  { %411 = vrot.lane.b32.xlu1 %v409_v26, %s604_s29 }
 0xf40   :  { %v412_v29 = vpop.permute.xlu1 %411 }
 0xf41   :  { %v414_v30 = vadd.f32 %v412_v29, %v404_v27 }
 0xf43   :  { %595 = vtanh.f32 %v414_v30 }
 0xf49   :  { %v596_v31 = vpop.eup %595 }
 0xf4a   :  { %417 = vrot.lane.b32.xlu2 %v596_v31, %s603_s3 }
 0xfa4   :  { %v418_v32 = vpop.permute.xlu2 %417 }
 0xfa5   :  { %v420_v33 = vmul.f32 %v418_v32, %v403_v24 }
 0xfa7   :  { %v421_v34 = vpack.c.bf16 %v420_v33, %v420_v33 }
 0xfa9   :  { %423 = vrot.lane.b32.xlu0 %v421_v34, %s604_s29 }
0x101b   :  { %v424_v35 = vpop.permute.xlu0 %423 }
0x101c   :  { %537 = vmatmul.msk.bf16.vlgmr.msra.gmra.mxu2 %vm137_vm4, %v424_v35 }
0x109f   :  { %v437_v39 = vpop.f32.mrf.mxu2 }
0x10a0   :  { %v441_v40 = vadd.f32 %v437_v39, %v120_v38 }
0x10a2   :  { %597 = vtanh.f32 %v441_v40 }
0x10a7   :  { %v439_v41 = vpop.f32.mrf.mxu2 }
0x10a8   :  { %v598_v42 = vpop.eup %597 }
0x10a9   :  { %v443_v43 = vmul.f32 %v598_v42, %v659_v12  ;;  %v552_v12 = vld [vmem:[%s774_s4] sm:$0xff] }
0x10aa   :  { %496 = vmatpush.bf16.msra.mxu3 %v552_v12 }
0x10ab   :  { %v444_v44 = vadd.f32 %v443_v43, %v674_v28 }
0x10ad   :  { %447 = vrot.lane.b32.xlu1 %v444_v44, %s603_s3  ;;  %v445_v47 = vmul.f32 %v444_v44, %v414_v30 }
0x111f   :  { %v448_v45 = vpop.permute.xlu1 %447 }
0x1120   :  { %v450_v46 = vmul.f32 %v448_v45, %v444_v44 }
0x1122   :  { %452 = vrot.lane.b32.xlu2 %v450_v46, %s604_s29 }
0x117c   :  { %v453_v48 = vpop.permute.xlu2 %452 }
0x117d   :  { %v455_v20 = vadd.f32 %v453_v48, %v445_v47 }
0x117f   :  { %599 = vtanh.f32 %v455_v20 }
0x1185   :  { %v600_v49 = vpop.eup %599 }
0x1186   :  { %458 = vrot.lane.b32.xlu0 %v600_v49, %s603_s3 }
0x11f8   :  { %v459_v28 = vpop.permute.xlu0 %458 }
0x11f9   :  { %v461_v51 = vmul.f32 %v459_v28, %v444_v44 }
0x11fb   :  { %v462_v52 = vpack.c.bf16 %v461_v51, %v461_v51 }
0x11fd   :  { %472 = vrot.lane.b32.xlu1 %v462_v52, %s604_s29 }
0x126f   :  { %v473_v53 = vpop.permute.xlu1 %472 }
0x1270   :  { %546 = vmatmul.msk.bf16.vlgmr.msra.gmra.mxu3 %vm137_vm4, %v473_v53 }
0x12f3   :  { %v498_v55 = vpop.f32.mrf.mxu3 }
0x12f4   :  { %v499_v56 = vadd.f32 %v568_v54, %v498_v55 }
0x12f6   :  { %502 = vst [vmem:[%s776_s6] sm:$0xff] %v499_v56 }
0x12fb   :  { %v500_v57 = vpop.f32.mrf.mxu3 }

</bundles_post_ra>
